<compile_context>
chip_gen: v7x
topology: tpu7x:2x2x1
jax: 0.10.0
libtpu: 0.0.40
codegen_flags: <defaults>
</compile_context>

<pallas_src>
import functools

import jax
import jax.numpy as jnp
import numpy as np
from jax.experimental import pallas as pl
from jax.experimental.pallas import tpu as pltpu

COMPUTE_DTYPE = jnp.bfloat16


# ----------------------------------------------------------------------------
# Kernels
# ----------------------------------------------------------------------------
def _matmul_bias_kernel(x_ref, w_ref, b_ref, o_ref, *, relu):
    # relu?( x @ w + b ), BN scale already folded into w, bias in f32.
    acc = jnp.dot(x_ref[...], w_ref[...], preferred_element_type=jnp.float32)
    out = acc + b_ref[...]
    if relu:
        out = jnp.maximum(out, 0.0)
    o_ref[...] = out.astype(o_ref.dtype)


def _matmul2_bias_relu_kernel(a_ref, wa_ref, c_ref, wc_ref, b_ref, o_ref):
    # relu( a @ wa + c @ wc + b )  -- conv3 + projection shortcut, fused.
    acc = jnp.dot(a_ref[...], wa_ref[...], preferred_element_type=jnp.float32)
    acc = acc + jnp.dot(c_ref[...], wc_ref[...], preferred_element_type=jnp.float32)
    out = jnp.maximum(acc + b_ref[...], 0.0)
    o_ref[...] = out.astype(o_ref.dtype)


def _matmul_bias_res_relu_kernel(a_ref, wa_ref, b_ref, r_ref, o_ref):
    # relu( a @ wa + b + r )       -- conv3 + identity shortcut, fused.
    acc = jnp.dot(a_ref[...], wa_ref[...], preferred_element_type=jnp.float32)
    out = jnp.maximum(acc + b_ref[...] + r_ref[...].astype(jnp.float32), 0.0)
    o_ref[...] = out.astype(o_ref.dtype)


def _conv3x3_bias_relu_kernel(x_ref, w_ref, b_ref, o_ref, *, stride, ho, wo):
    # 3x3 conv (padding=1, given stride) over one image as 9 shifted
    # (Ho*Wo, Cin) @ (Cin, tCout) matmuls accumulated in f32, + bias + ReLU.
    # x_ref: (stride*stride, Hph, Wph, Cin) phase-decomposed padded image.
    # w_ref: (9, Cin, tCout)  -- output-channel block of the folded weights.
    cin = w_ref.shape[1]
    tcout = w_ref.shape[2]
    s = stride
    acc = jnp.zeros((ho * wo, tcout), jnp.float32)
    for dy in range(3):
        for dx in range(3):
            p = (dy % s) * s + (dx % s)          # phase plane
            oy, ox = dy // s, dx // s            # contiguous window offset
            win = x_ref[p, oy:oy + ho, ox:ox + wo, :]
            acc = acc + jnp.dot(win.reshape(ho * wo, cin), w_ref[dy * 3 + dx],
                                preferred_element_type=jnp.float32)
    out = jnp.maximum(acc + b_ref[...], 0.0)
    o_ref[0] = out.reshape(ho, wo, tcout).astype(o_ref.dtype)


# ----------------------------------------------------------------------------
# Pallas-call wrappers
# ----------------------------------------------------------------------------
def _pick_tm(m, tm=512):
    return m if m <= tm else tm


def _pick_tn(nout):
    # Lane-dense output tiles: full extent if small, else the largest of
    # 512/256/128 that divides the channel count (ResNet channels are
    # multiples of 128 past the stem).
    if nout <= 512:
        return nout
    for tn in (512, 256, 128):
        if nout % tn == 0:
            return tn
    return nout


def matmul_bias(x, w, b, *, relu, out_dtype, tm=512):
    M, K = x.shape
    _, Nout = w.shape
    tm = _pick_tm(M, tm)
    tn = _pick_tn(Nout)
    grid = (pl.cdiv(M, tm), pl.cdiv(Nout, tn))
    return pl.pallas_call(
        functools.partial(_matmul_bias_kernel, relu=relu),
        out_shape=jax.ShapeDtypeStruct((M, Nout), out_dtype),
        grid_spec=pltpu.PrefetchScalarGridSpec(
            num_scalar_prefetch=0,
            grid=grid,
            in_specs=[
                pl.BlockSpec((tm, K), lambda i, j: (i, 0)),
                pl.BlockSpec((K, tn), lambda i, j: (0, j)),
                pl.BlockSpec((1, tn), lambda i, j: (0, j)),
            ],
            out_specs=pl.BlockSpec((tm, tn), lambda i, j: (i, j)),
        ),
        compiler_params=pltpu.CompilerParams(
            dimension_semantics=("parallel", "parallel")),
    )(x, w, b)


def matmul2_bias_relu(a, wa, c, wc, b, *, out_dtype, tm=512):
    M, Ka = a.shape
    _, Nout = wa.shape
    Kc = c.shape[1]
    tm = _pick_tm(M, tm)
    tn = _pick_tn(Nout)
    grid = (pl.cdiv(M, tm), pl.cdiv(Nout, tn))
    return pl.pallas_call(
        _matmul2_bias_relu_kernel,
        out_shape=jax.ShapeDtypeStruct((M, Nout), out_dtype),
        grid_spec=pltpu.PrefetchScalarGridSpec(
            num_scalar_prefetch=0,
            grid=grid,
            in_specs=[
                pl.BlockSpec((tm, Ka), lambda i, j: (i, 0)),
                pl.BlockSpec((Ka, tn), lambda i, j: (0, j)),
                pl.BlockSpec((tm, Kc), lambda i, j: (i, 0)),
                pl.BlockSpec((Kc, tn), lambda i, j: (0, j)),
                pl.BlockSpec((1, tn), lambda i, j: (0, j)),
            ],
            out_specs=pl.BlockSpec((tm, tn), lambda i, j: (i, j)),
        ),
        compiler_params=pltpu.CompilerParams(
            dimension_semantics=("parallel", "parallel")),
    )(a, wa, c, wc, b)


def matmul_bias_res_relu(a, wa, b, r, *, out_dtype, tm=512):
    M, Ka = a.shape
    _, Nout = wa.shape
    tm = _pick_tm(M, tm)
    tn = _pick_tn(Nout)
    grid = (pl.cdiv(M, tm), pl.cdiv(Nout, tn))
    return pl.pallas_call(
        _matmul_bias_res_relu_kernel,
        out_shape=jax.ShapeDtypeStruct((M, Nout), out_dtype),
        grid_spec=pltpu.PrefetchScalarGridSpec(
            num_scalar_prefetch=0,
            grid=grid,
            in_specs=[
                pl.BlockSpec((tm, Ka), lambda i, j: (i, 0)),
                pl.BlockSpec((Ka, tn), lambda i, j: (0, j)),
                pl.BlockSpec((1, tn), lambda i, j: (0, j)),
                pl.BlockSpec((tm, tn), lambda i, j: (i, j)),
            ],
            out_specs=pl.BlockSpec((tm, tn), lambda i, j: (i, j)),
        ),
        compiler_params=pltpu.CompilerParams(
            dimension_semantics=("parallel", "parallel")),
    )(a, wa, b, r)


def conv3x3_bias_relu(xphase, w_taps, bias, *, batch, ho, wo, stride, out_dtype):
    P = stride * stride
    _, hph, wph, cin = xphase.shape
    cout = w_taps.shape[2]
    tn = _pick_tn(cout)                       # tile output channels lane-dense
    kernel = functools.partial(_conv3x3_bias_relu_kernel, stride=stride, ho=ho, wo=wo)
    return pl.pallas_call(
        kernel,
        out_shape=jax.ShapeDtypeStruct((batch, ho, wo, cout), out_dtype),
        grid_spec=pltpu.PrefetchScalarGridSpec(
            num_scalar_prefetch=0,
            grid=(batch, pl.cdiv(cout, tn)),
            in_specs=[
                pl.BlockSpec((P, hph, wph, cin), lambda i, j: (i, 0, 0, 0)),
                pl.BlockSpec((9, cin, tn), lambda i, j: (0, 0, j)),
                pl.BlockSpec((1, tn), lambda i, j: (0, j)),
            ],
            out_specs=pl.BlockSpec((1, ho, wo, tn), lambda i, j: (i, 0, 0, j)),
        ),
        compiler_params=pltpu.CompilerParams(
            dimension_semantics=("parallel", "parallel")),
    )(xphase, w_taps, bias)


# ----------------------------------------------------------------------------
# Glue (plain JAX): BN folding, phase decomposition, parameter init
# ----------------------------------------------------------------------------
def fold_bn(bn, eps=1e-5):
    scale = bn["gamma"] / jnp.sqrt(bn["var"] + eps)
    bias = bn["beta"] - bn["mean"] * scale
    return scale.reshape(1, -1), bias.reshape(1, -1)


def _phase_decompose(x_nhwc, stride, ho, wo):
    """Pad (1,1,1,?) and split into stride*stride phase planes so every 3x3 tap
    becomes a CONTIGUOUS window inside the kernel.  For stride==1 this is just
    the padded image (single phase)."""
    n, h, w, c = x_nhwc.shape
    s = stride
    hph = ho + (2 + s - 1) // s
    wph = wo + (2 + s - 1) // s
    pad_b = s * hph - 1 - h
    pad_r = s * wph - 1 - w
    xp = jnp.pad(x_nhwc, ((0, 0), (1, pad_b), (1, pad_r), (0, 0)))
    if s == 1:
        return xp                                   # (n*1, hph, wph, c)
    xp = xp.reshape(n, hph, s, wph, s, c)
    xp = jnp.transpose(xp, (0, 2, 4, 1, 3, 5))      # (n, s, s, hph, wph, c)
    return xp.reshape(n * s * s, hph, wph, c)


def init_params(key, in_channels, out_channels, stride, expansion=4):
    c_mid = out_channels
    c_exp = out_channels * expansion
    ks = jax.random.split(key, 16)

    def bn_params(k, c):
        k1, k2, k3, k4 = jax.random.split(k, 4)
        return {
            "gamma": jax.random.uniform(k1, (c,), jnp.float32, 0.5, 1.5),
            "beta": jax.random.normal(k2, (c,), jnp.float32) * 0.1,
            "mean": jax.random.normal(k3, (c,), jnp.float32) * 0.1,
            "var": jax.random.uniform(k4, (c,), jnp.float32, 0.5, 1.5),
        }

    p = {
        "w1": jax.random.normal(ks[0], (c_mid, in_channels, 1, 1), jnp.float32) * 0.1,
        "bn1": bn_params(ks[1], c_mid),
        "w2": jax.random.normal(ks[2], (c_mid, c_mid, 3, 3), jnp.float32) * 0.1,
        "bn2": bn_params(ks[3], c_mid),
        "w3": jax.random.normal(ks[4], (c_exp, c_mid, 1, 1), jnp.float32) * 0.1,
        "bn3": bn_params(ks[5], c_exp),
        "stride": stride,
        "has_shortcut": (stride != 1 or in_channels != c_exp),
    }
    if p["has_shortcut"]:
        p["w_sc"] = jax.random.normal(ks[6], (c_exp, in_channels, 1, 1), jnp.float32) * 0.1
        p["bn_sc"] = bn_params(ks[7], c_exp)
    return p


# ----------------------------------------------------------------------------
# Bottleneck forward (Pallas)
# ----------------------------------------------------------------------------
def bottleneck_forward_nhwc(x_nhwc, p):
    stride = p["stride"]
    n, h, w_, c_in = x_nhwc.shape
    x_flat = x_nhwc.reshape(n * h * w_, c_in).astype(COMPUTE_DTYPE)

    # ---- conv1 (1x1) + bn1 (folded) + relu ---------------------------------
    s1, b1 = fold_bn(p["bn1"])
    c_mid = p["w1"].shape[0]
    w1 = (p["w1"].reshape(c_mid, c_in).T * s1).astype(COMPUTE_DTYPE)       # (Cin, Cmid)
    out1 = matmul_bias(x_flat, w1, b1, relu=True, out_dtype=COMPUTE_DTYPE)  # (M, Cmid) bf16

    # ---- conv2 (3x3, stride, pad=1) + bn2 (folded) + relu, fully in-kernel --
    ho = (h - 1) // stride + 1
    wo = (w_ - 1) // stride + 1
    xphase = _phase_decompose(out1.reshape(n, h, w_, c_mid), stride, ho, wo)
    s2, b2 = fold_bn(p["bn2"])
    w2_taps = (jnp.transpose(p["w2"], (2, 3, 1, 0)) * s2.reshape(1, 1, 1, -1))
    w2_taps = w2_taps.reshape(9, c_mid, c_mid).astype(COMPUTE_DTYPE)        # (9, Cin, Cout)
    out2 = conv3x3_bias_relu(xphase, w2_taps, b2, batch=n, ho=ho, wo=wo,
                             stride=stride, out_dtype=COMPUTE_DTYPE)        # (N,Ho,Wo,Cmid)
    out2_flat = out2.reshape(n * ho * wo, c_mid)

    # ---- conv3 (1x1) + bn3 + shortcut + residual add + relu, one kernel -----
    c_exp = p["w3"].shape[0]
    s3, b3 = fold_bn(p["bn3"])
    w3 = (p["w3"].reshape(c_exp, c_mid).T * s3).astype(COMPUTE_DTYPE)       # (Cmid, Cexp)
    if p["has_shortcut"]:
        s_sc, b_sc = fold_bn(p["bn_sc"])
        w_sc = (p["w_sc"].reshape(c_exp, c_in).T * s_sc).astype(COMPUTE_DTYPE)
        if stride == 1:
            xs_flat = x_flat
        else:
            xs_flat = x_nhwc[:, ::stride, ::stride, :].reshape(
                n * ho * wo, c_in).astype(COMPUTE_DTYPE)
        out3 = matmul2_bias_relu(out2_flat, w3, xs_flat, w_sc, b3 + b_sc,
                                 out_dtype=jnp.float32)
    else:
        # identity shortcut (stride == 1, c_in == c_exp)
        out3 = matmul_bias_res_relu(out2_flat, w3, b3, x_flat, out_dtype=jnp.float32)

    return out3.reshape(n, ho, wo, c_exp)


def bottleneck_forward(x_nchw, p):
    # NCHW module boundary (transposes could be hoisted once per network).
    x = jnp.transpose(x_nchw, (0, 2, 3, 1))
    out = bottleneck_forward_nhwc(x, p)
    return jnp.transpose(out, (0, 3, 1, 2))


# ----------------------------------------------------------------------------
# Pure-JAX reference (for verification only)
# ----------------------------------------------------------------------------
def bottleneck_ref(x, p, eps=1e-5):
    def conv(x, w, stride, padding):
        return jax.lax.conv_general_dilated(
            x, w, (stride, stride), padding,
            dimension_numbers=("NCHW", "OIHW", "NCHW"))

    def bn(x, bp):
        scale = bp["gamma"] / jnp.sqrt(bp["var"] + eps)
        bias = bp["beta"] - bp["mean"] * scale
        return x * scale[None, :, None, None] + bias[None, :, None, None]

    stride = p["stride"]
    out = jax.nn.relu(bn(conv(x, p["w1"], 1, "VALID"), p["bn1"]))
    out = jax.nn.relu(bn(conv(out, p["w2"], stride, [(1, 1), (1, 1)]), p["bn2"]))
    out = bn(conv(out, p["w3"], 1, "VALID"), p["bn3"])
    if p["has_shortcut"]:
        sc = bn(conv(x, p["w_sc"], stride, "VALID"), p["bn_sc"])
    else:
        sc = x
    return jax.nn.relu(out + sc)


# ----------------------------------------------------------------------------
if __name__ == "__main__":
    key = jax.random.PRNGKey(0)

    configs = [
        # (batch, in_channels, out_channels, spatial, stride)
        (2, 16, 8, 16, 1),   # projection shortcut (channel change), stride 1
        (2, 32, 8, 16, 2),   # projection shortcut, stride 2 (phase-decomposed conv2)
        (2, 32, 8, 8, 1),    # identity shortcut (in_channels == out*4)
    ]
    for idx, (batch, cin, cout, spatial, stride) in enumerate(configs):
        k_x, k_p = jax.random.split(jax.random.fold_in(key, idx))
        x = jax.random.normal(k_x, (batch, cin, spatial, spatial), jnp.float32)
        params = init_params(k_p, cin, cout, stride)

        y = jax.block_until_ready(bottleneck_forward(x, params))
        y_ref = jax.block_until_ready(bottleneck_ref(x, params))
        np.testing.assert_allclose(np.asarray(y), np.asarray(y_ref),
                                   rtol=5e-2, atol=5e-2)

    print("KERNEL_OK")
</pallas_src>

<mosaic_0001>
module attributes {stable_mosaic.version = 11 : i64} {
  func.func @_matmul_bias_kernel(%arg0: i32, %arg1: i32, %arg2: memref<512x16xbf16, #tpu.memory_space<vmem>>, %arg3: memref<16x8xbf16, #tpu.memory_space<vmem>>, %arg4: memref<1x8xf32, #tpu.memory_space<vmem>>, %arg5: memref<512x8xbf16, #tpu.memory_space<vmem>>) attributes {dimension_semantics = [#tpu.dimension_semantics<parallel>, #tpu.dimension_semantics<parallel>], iteration_bounds = array<i64: 1, 1>, scalar_prefetch = 0 : i64, scratch_operands = 0 : i64, tpu.core_type = #tpu.core_type<tc>, window_params = [{transform_indices = @transform_0, window_bounds = array<i64: 512, 16>}, {transform_indices = @transform_1, window_bounds = array<i64: 16, 8>}, {transform_indices = @transform_2, window_bounds = array<i64: 1, 8>}, {transform_indices = @transform_3, window_bounds = array<i64: 512, 8>}]} {
    %c0 = arith.constant 0 : index
    %c0_0 = arith.constant 0 : index
    %0 = vector.load %arg2[%c0, %c0_0] : memref<512x16xbf16, #tpu.memory_space<vmem>>, vector<512x16xbf16>
    %c0_1 = arith.constant 0 : index
    %c0_2 = arith.constant 0 : index
    %1 = vector.load %arg3[%c0_1, %c0_2] : memref<16x8xbf16, #tpu.memory_space<vmem>>, vector<16x8xbf16>
    %cst = arith.constant dense<0.000000e+00> : vector<512x8xf32>
    %2 = tpu.matmul %0, %1, %cst {dimension_numbers = #tpu.dot_dimension_numbers<[1], [0], [0], [1], [0, 0, 1, 1], [], []>} : vector<512x16xbf16>, vector<16x8xbf16>, vector<512x8xf32> -> vector<512x8xf32>
    %c0_3 = arith.constant 0 : index
    %c0_4 = arith.constant 0 : index
    %3 = vector.load %arg4[%c0_3, %c0_4] : memref<1x8xf32, #tpu.memory_space<vmem>>, vector<1x8xf32>
    %4 = vector.broadcast %3 : vector<1x8xf32> to vector<512x8xf32>
    %5 = arith.addf %2, %4 : vector<512x8xf32>
    %cst_5 = arith.constant 0.000000e+00 : f32
    %6 = vector.broadcast %cst_5 : f32 to vector<512x8xf32>
    %7 = arith.maximumf %5, %6 : vector<512x8xf32>
    %8 = arith.truncf %7 : vector<512x8xf32> to vector<512x8xbf16>
    %c0_6 = arith.constant 0 : index
    %c0_7 = arith.constant 0 : index
    %9 = vector.load %arg5[%c0_6, %c0_7] : memref<512x8xbf16, #tpu.memory_space<vmem>>, vector<512x8xbf16>
    tpu.vector_store %arg5[%c0_6, %c0_7], %8 {strides = array<i32>} : memref<512x8xbf16, #tpu.memory_space<vmem>>, vector<512x8xbf16>,
    return
  }
  func.func @transform_0(%arg0: i32, %arg1: i32) -> (i32, i32) {
    %c0_i32 = arith.constant 0 : i32
    %c0_i32_0 = arith.constant 0 : i32
    return %arg0, %c0_i32 : i32, i32
  }
  func.func @transform_1(%arg0: i32, %arg1: i32) -> (i32, i32) {
    %c0_i32 = arith.constant 0 : i32
    %c0_i32_0 = arith.constant 0 : i32
    return %c0_i32, %arg1 : i32, i32
  }
  func.func @transform_2(%arg0: i32, %arg1: i32) -> (i32, i32) {
    %c0_i32 = arith.constant 0 : i32
    %c0_i32_0 = arith.constant 0 : i32
    return %c0_i32, %arg1 : i32, i32
  }
  func.func @transform_3(%arg0: i32, %arg1: i32) -> (i32, i32) {
    %c0_i32 = arith.constant 0 : i32
    return %arg0, %arg1 : i32, i32
  }
}

</mosaic_0001>

<bundles_post_ra>
// kernel: tpu_custom_call.1
= control target key start
LH: loop header
LB: loop body
LE: loop exit
PB: predicated region body
PF: predicated region fallthrough
CT: control target
= control target key end

     0   :  { %vm254_vm0 = vcmask 130048   ;;  %vm960_vm1 = vcmask 60416   ;;  %s1833_s1 = inlined_call_operand.vmem [shape: bf16[16,8], index: 1, kind: input, shape index: {}]   ;;  %s1834_s0 = inlined_call_operand.vmem [shape: bf16[512,16], index: 0, kind: input, shape index: {}]   ;;  %s1835_s2 = inlined_call_operand.vmem [shape: f32[1,8], index: 2, kind: input, shape index: {}]   ;;  %s1836_s3 = inlined_call_operand.vmem [shape: bf16[512,8], index: 3, kind: output, shape index: {}]  }
   0x1   :  { %v1324_v0 = vld [vmem:[%s1833_s1] sm:$0xff]   ;;  %v1327_v3 = vld [vmem:[%s1834_s0 + $0x8] sm:$0xff]   ;;  %v1329_v5 = vld [vmem:[%s1834_s0 + $0x10] sm:$0xff]  }
   0x2   :  { %v1325_v1 = vld [vmem:[%s1834_s0] sm:$0xff]   ;;  %1256 = vmatprep.subr.bf16.mxu0 %v1324_v0  ;;  %1322 = vmatprep.subr.bf16.mxu1 %v1324_v0  ;;  %v1328_v4 = vld [vmem:[%s1834_s0 + $0x88] sm:$0xff]   ;;  %v1330_v6 = vld [vmem:[%s1834_s0 + $0x90] sm:$0xff]  }
   0x3   :  { %v1326_v2 = vld [vmem:[%s1834_s0 + $0x80] sm:$0xff]   ;;  %1257 = vmatpush3.bf16.msra.mxu0 %v1324_v0  ;;  %1323 = vmatpush3.bf16.msra.mxu1 %v1324_v0  ;;  %v1331_v7 = vld [vmem:[%s1834_s0 + $0x18] sm:$0xff]   ;;  %v1335_v11 = vld [vmem:[%s1834_s0 + $0x28] sm:$0xff]  }
   0x4   :  { %1258 = vmatprep.mubr.msk.bf16.mxu0 %vm254_vm0, %v1325_v1  ;;  %1290 = vmatprep.mubr.msk.bf16.mxu1 %vm254_vm0, %v1326_v2  ;;  %v1332_v8 = vld [vmem:[%s1834_s0 + $0x98] sm:$0xff]   ;;  %v1333_v9 = vld [vmem:[%s1834_s0 + $0x20] sm:$0xff]   ;;  %v1336_v12 = vld [vmem:[%s1834_s0 + $0xa8] sm:$0xff]  }
   0x5   :  { %v1334_v10 = vld [vmem:[%s1834_s0 + $0xa0] sm:$0xff]   ;;  %v1337_v13 = vld [vmem:[%s1834_s0 + $0x30] sm:$0xff]   ;;  %v1339_v15 = vld [vmem:[%s1834_s0 + $0x38] sm:$0xff]  }
   0x6   :  { %1259 = vmatmul.mubr.msk.bf16.vlgmr.msra.gmra.mrb[0].mxu0 %vm254_vm0, %v1327_v3  ;;  %1291 = vmatmul.mubr.msk.bf16.vlgmr.msra.gmra.mrb[0].mxu1 %vm254_vm0, %v1328_v4  ;;  %v1338_v14 = vld [vmem:[%s1834_s0 + $0xb0] sm:$0xff]   ;;  %v1340_v16 = vld [vmem:[%s1834_s0 + $0xb8] sm:$0xff]   ;;  %v1341_v17 = vld [vmem:[%s1834_s0 + $0x40] sm:$0xff]  }
   0x7   :  { %1262 = vmatprep.mubr.msk.bf16.mxu0 %vm254_vm0, %v1329_v5  ;;  %1294 = vmatprep.mubr.msk.bf16.mxu1 %vm254_vm0, %v1330_v6  ;;  %v1342_v18 = vld [vmem:[%s1834_s0 + $0xc0] sm:$0xff]   ;;  %v1343_v19 = vld [vmem:[%s1834_s0 + $0x48] sm:$0xff]   ;;  %v1345_v21 = vld [vmem:[%s1834_s0 + $0x50] sm:$0xff]  }
   0x8   :  { %v1344_v20 = vld [vmem:[%s1834_s0 + $0xc8] sm:$0xff]   ;;  %v1346_v22 = vld [vmem:[%s1834_s0 + $0xd0] sm:$0xff]   ;;  %v1347_v23 = vld [vmem:[%s1834_s0 + $0x58] sm:$0xff]  }
   0x9   :  { %v1348_v24 = vld [vmem:[%s1834_s0 + $0xd8] sm:$0xff]   ;;  %v1349_v25 = vld [vmem:[%s1834_s0 + $0x60] sm:$0xff]   ;;  %v1351_v27 = vld [vmem:[%s1834_s0 + $0x68] sm:$0xff]  }
   0xa   :  { %v1350_v26 = vld [vmem:[%s1834_s0 + $0xe0] sm:$0xff]   ;;  %v1352_v28 = vld [vmem:[%s1834_s0 + $0xe8] sm:$0xff]   ;;  %v1353_v29 = vld [vmem:[%s1834_s0 + $0x70] sm:$0xff]  }
   0xb   :  { %v1354_v30 = vld [vmem:[%s1834_s0 + $0xf0] sm:$0xff]   ;;  %v1355_v31 = vld [vmem:[%s1834_s0 + $0x78] sm:$0xff]   ;;  %v1511_v33 = vld [vmem:[%s1835_s2] ss:$0 sm:$0xff] }
   0xc   :  { %v1356_v32 = vld [vmem:[%s1834_s0 + $0xf8] sm:$0xff]  }
   0xe   :  { %1263 = vmatmul.mubr.msk.bf16.gmra.mrb[4].mxu0 %vm254_vm0, %v1331_v7  ;;  %1295 = vmatmul.mubr.msk.bf16.gmra.mrb[4].mxu1 %vm254_vm0, %v1332_v8 }
   0xf   :  { %1266 = vmatprep.mubr.msk.bf16.mxu0 %vm254_vm0, %v1333_v9  ;;  %1298 = vmatprep.mubr.msk.bf16.mxu1 %vm254_vm0, %v1334_v10 }
  0x16   :  { %1267 = vmatmul.mubr.msk.bf16.gmra.mrb[8].mxu0 %vm254_vm0, %v1335_v11  ;;  %1299 = vmatmul.mubr.msk.bf16.gmra.mrb[8].mxu1 %vm254_vm0, %v1336_v12 }
  0x17   :  { %1270 = vmatprep.mubr.msk.bf16.mxu0 %vm254_vm0, %v1337_v13  ;;  %1302 = vmatprep.mubr.msk.bf16.mxu1 %vm254_vm0, %v1338_v14 }
  0x1e   :  { %1271 = vmatmul.mubr.msk.bf16.gmra.mrb[12].mxu0 %vm254_vm0, %v1339_v15  ;;  %1303 = vmatmul.mubr.msk.bf16.gmra.mrb[12].mxu1 %vm254_vm0, %v1340_v16 }
  0x1f   :  { %1274 = vmatprep.mubr.msk.bf16.mxu0 %vm254_vm0, %v1341_v17  ;;  %1306 = vmatprep.mubr.msk.bf16.mxu1 %vm254_vm0, %v1342_v18 }
  0x26   :  { %1275 = vmatmul.mubr.msk.bf16.gmra.mrb[16].mxu0 %vm254_vm0, %v1343_v19  ;;  %1307 = vmatmul.mubr.msk.bf16.gmra.mrb[16].mxu1 %vm254_vm0, %v1344_v20 }
  0x27   :  { %1278 = vmatprep.mubr.msk.bf16.mxu0 %vm254_vm0, %v1345_v21  ;;  %1310 = vmatprep.mubr.msk.bf16.mxu1 %vm254_vm0, %v1346_v22 }
  0x2e   :  { %1279 = vmatmul.mubr.msk.bf16.gmra.mrb[20].mxu0 %vm254_vm0, %v1347_v23  ;;  %1311 = vmatmul.mubr.msk.bf16.gmra.mrb[20].mxu1 %vm254_vm0, %v1348_v24 }
  0x2f   :  { %1282 = vmatprep.mubr.msk.bf16.mxu0 %vm254_vm0, %v1349_v25  ;;  %1314 = vmatprep.mubr.msk.bf16.mxu1 %vm254_vm0, %v1350_v26 }
  0x36   :  { %1283 = vmatmul.mubr.msk.bf16.gmra.mrb[24].mxu0 %vm254_vm0, %v1351_v27  ;;  %1315 = vmatmul.mubr.msk.bf16.gmra.mrb[24].mxu1 %vm254_vm0, %v1352_v28 }
  0x37   :  { %1286 = vmatprep.mubr.msk.bf16.mxu0 %vm254_vm0, %v1353_v29  ;;  %1318 = vmatprep.mubr.msk.bf16.mxu1 %vm254_vm0, %v1354_v30 }
  0x3e   :  { %1287 = vmatmul.mubr.msk.bf16.gmra.mrb[28].mxu0 %vm254_vm0, %v1355_v31  ;;  %1319 = vmatmul.mubr.msk.bf16.gmra.mrb[28].mxu1 %vm254_vm0, %v1356_v32 }
  0xd9   :  { %v1260_v34 = vpop.f32.mrb[0].mxu0  ;;  %v1292_v35 = vpop.f32.mrb[0].mxu1 }
  0xda   :  { %v394_v36 = vadd.f32 %v1260_v34, %v1511_v33  ;;  %v522_v37 = vadd.f32 %v1292_v35, %v1511_v33  ;;  %v385_v38 = vpop.f32.mrb[1].mxu0  ;;  %v513_v39 = vpop.f32.mrb[1].mxu1 }
  0xdb   :  { %v386_v40 = vadd.f32 %v1511_v33, %v385_v38  ;;  %v514_v41 = vadd.f32 %v1511_v33, %v513_v39  ;;  %v1261_v42 = vpop.f32.mrb[2].mxu0  ;;  %v1293_v43 = vpop.f32.mrb[2].mxu1 }
  0xdc   :  { %v642_v44 = vmax.f32 %v394_v36, 0.0  ;;  %v674_v45 = vmax.f32 %v522_v37, 0.0  ;;  %v397_v46 = vadd.f32 %v1261_v42, %v1511_v33  ;;  %v525_v47 = vadd.f32 %v1293_v43, %v1511_v33  ;;  %v388_v48 = vpop.f32.mrb[3].mxu0  ;;  %v516_v49 = vpop.f32.mrb[3].mxu1 }
  0xdd   :  { %v640_v50 = vmax.f32 %v386_v40, 0.0  ;;  %v672_v51 = vmax.f32 %v514_v41, 0.0  ;;  %v389_v52 = vadd.f32 %v1511_v33, %v388_v48  ;;  %v517_v53 = vadd.f32 %v1511_v33, %v516_v49 }
  0xde   :  { %v1161_v54 = vpack.c.bf16 %v642_v44, %v642_v44  ;;  %v1193_v55 = vpack.c.bf16 %v674_v45, %v674_v45  ;;  %v643_v56 = vmax.f32 %v397_v46, 0.0  ;;  %v675_v57 = vmax.f32 %v525_v47, 0.0 }
  0xdf   :  { %v1159_v58 = vpack.c.bf16 %v640_v50, %v640_v50  ;;  %v1191_v59 = vpack.c.bf16 %v672_v51, %v672_v51  ;;  %v641_v60 = vmax.f32 %v389_v52, 0.0  ;;  %v673_v61 = vmax.f32 %v517_v53, 0.0 }
  0xe0   :  { %963 = vst.msk [vmem:[%s1836_s3 + $0x8] sm:$0xf] %vm960_vm1, %v1161_v54  ;;  %995 = vst.msk [vmem:[%s1836_s3 + $0x88] sm:$0xf] %vm960_vm1, %v1193_v55  ;;  %v1162_v62 = vpack.c.bf16 %v643_v56, %v643_v56  ;;  %v1194_v63 = vpack.c.bf16 %v675_v57, %v675_v57 }
  0xe1   :  { %961 = vst.msk [vmem:[%s1836_s3] sm:$0xf] %vm960_vm1, %v1159_v58  ;;  %993 = vst.msk [vmem:[%s1836_s3 + $0x80] sm:$0xf] %vm960_vm1, %v1191_v59  ;;  %v1160_v0 = vpack.c.bf16 %v641_v60, %v641_v60  ;;  %v1192_v1 = vpack.c.bf16 %v673_v61, %v673_v61  ;;  %v1264_v2 = vpop.f32.mrb[4].mxu0  ;;  %v1296_v3 = vpop.f32.mrb[4].mxu1 }
  0xe2   :  { %964 = vst.msk [vmem:[%s1836_s3 + $0xc] sm:$0xf] %vm960_vm1, %v1162_v62  ;;  %996 = vst.msk [vmem:[%s1836_s3 + $0x8c] sm:$0xf] %vm960_vm1, %v1194_v63  ;;  %v410_v4 = vadd.f32 %v1264_v2, %v1511_v33  ;;  %v538_v5 = vadd.f32 %v1296_v3, %v1511_v33  ;;  %v401_v6 = vpop.f32.mrb[5].mxu0  ;;  %v529_v7 = vpop.f32.mrb[5].mxu1 }
  0xe3   :  { %962 = vst.msk [vmem:[%s1836_s3 + $0x4] sm:$0xf] %vm960_vm1, %v1160_v0  ;;  %994 = vst.msk [vmem:[%s1836_s3 + $0x84] sm:$0xf] %vm960_vm1, %v1192_v1  ;;  %v402_v8 = vadd.f32 %v1511_v33, %v401_v6  ;;  %v530_v9 = vadd.f32 %v1511_v33, %v529_v7  ;;  %v1265_v10 = vpop.f32.mrb[6].mxu0  ;;  %v1297_v11 = vpop.f32.mrb[6].mxu1 }
  0xe4   :  { %v646_v12 = vmax.f32 %v410_v4, 0.0  ;;  %v678_v13 = vmax.f32 %v538_v5, 0.0  ;;  %v413_v14 = vadd.f32 %v1265_v10, %v1511_v33  ;;  %v541_v15 = vadd.f32 %v1297_v11, %v1511_v33  ;;  %v404_v16 = vpop.f32.mrb[7].mxu0  ;;  %v532_v17 = vpop.f32.mrb[7].mxu1 }
  0xe5   :  { %v644_v18 = vmax.f32 %v402_v8, 0.0  ;;  %v676_v19 = vmax.f32 %v530_v9, 0.0  ;;  %v405_v20 = vadd.f32 %v1511_v33, %v404_v16  ;;  %v533_v21 = vadd.f32 %v1511_v33, %v532_v17 }
  0xe6   :  { %v1165_v22 = vpack.c.bf16 %v646_v12, %v646_v12  ;;  %v1197_v23 = vpack.c.bf16 %v678_v13, %v678_v13  ;;  %v647_v24 = vmax.f32 %v413_v14, 0.0  ;;  %v679_v25 = vmax.f32 %v541_v15, 0.0 }
  0xe7   :  { %v1163_v26 = vpack.c.bf16 %v644_v18, %v644_v18  ;;  %v1195_v27 = vpack.c.bf16 %v676_v19, %v676_v19  ;;  %v645_v28 = vmax.f32 %v405_v20, 0.0  ;;  %v677_v29 = vmax.f32 %v533_v21, 0.0 }
  0xe8   :  { %967 = vst.msk [vmem:[%s1836_s3 + $0x18] sm:$0xf] %vm960_vm1, %v1165_v22  ;;  %999 = vst.msk [vmem:[%s1836_s3 + $0x98] sm:$0xf] %vm960_vm1, %v1197_v23  ;;  %v1166_v30 = vpack.c.bf16 %v647_v24, %v647_v24  ;;  %v1198_v31 = vpack.c.bf16 %v679_v25, %v679_v25 }
  0xe9   :  { %965 = vst.msk [vmem:[%s1836_s3 + $0x10] sm:$0xf] %vm960_vm1, %v1163_v26  ;;  %997 = vst.msk [vmem:[%s1836_s3 + $0x90] sm:$0xf] %vm960_vm1, %v1195_v27  ;;  %v1164_v32 = vpack.c.bf16 %v645_v28, %v645_v28  ;;  %v1196_v34 = vpack.c.bf16 %v677_v29, %v677_v29  ;;  %v1268_v35 = vpop.f32.mrb[8].mxu0  ;;  %v1300_v36 = vpop.f32.mrb[8].mxu1 }
  0xea   :  { %968 = vst.msk [vmem:[%s1836_s3 + $0x1c] sm:$0xf] %vm960_vm1, %v1166_v30  ;;  %1000 = vst.msk [vmem:[%s1836_s3 + $0x9c] sm:$0xf] %vm960_vm1, %v1198_v31  ;;  %v426_v37 = vadd.f32 %v1268_v35, %v1511_v33  ;;  %v554_v38 = vadd.f32 %v1300_v36, %v1511_v33  ;;  %v417_v39 = vpop.f32.mrb[9].mxu0  ;;  %v545_v40 = vpop.f32.mrb[9].mxu1 }
  0xeb   :  { %966 = vst.msk [vmem:[%s1836_s3 + $0x14] sm:$0xf] %vm960_vm1, %v1164_v32  ;;  %998 = vst.msk [vmem:[%s1836_s3 + $0x94] sm:$0xf] %vm960_vm1, %v1196_v34  ;;  %v418_v41 = vadd.f32 %v1511_v33, %v417_v39  ;;  %v546_v42 = vadd.f32 %v1511_v33, %v545_v40  ;;  %v1269_v43 = vpop.f32.mrb[10].mxu0  ;;  %v1301_v44 = vpop.f32.mrb[10].mxu1 }
  0xec   :  { %v650_v45 = vmax.f32 %v426_v37, 0.0  ;;  %v682_v46 = vmax.f32 %v554_v38, 0.0  ;;  %v429_v47 = vadd.f32 %v1269_v43, %v1511_v33  ;;  %v557_v48 = vadd.f32 %v1301_v44, %v1511_v33  ;;  %v420_v49 = vpop.f32.mrb[11].mxu0  ;;  %v548_v50 = vpop.f32.mrb[11].mxu1 }
  0xed   :  { %v648_v51 = vmax.f32 %v418_v41, 0.0  ;;  %v680_v52 = vmax.f32 %v546_v42, 0.0  ;;  %v421_v53 = vadd.f32 %v1511_v33, %v420_v49  ;;  %v549_v54 = vadd.f32 %v1511_v33, %v548_v50 }
  0xee   :  { %v1169_v55 = vpack.c.bf16 %v650_v45, %v650_v45  ;;  %v1201_v56 = vpack.c.bf16 %v682_v46, %v682_v46  ;;  %v651_v57 = vmax.f32 %v429_v47, 0.0  ;;  %v683_v58 = vmax.f32 %v557_v48, 0.0 }
  0xef   :  { %v1167_v59 = vpack.c.bf16 %v648_v51, %v648_v51  ;;  %v1199_v60 = vpack.c.bf16 %v680_v52, %v680_v52  ;;  %v649_v61 = vmax.f32 %v421_v53, 0.0  ;;  %v681_v62 = vmax.f32 %v549_v54, 0.0 }
  0xf0   :  { %971 = vst.msk [vmem:[%s1836_s3 + $0x28] sm:$0xf] %vm960_vm1, %v1169_v55  ;;  %1003 = vst.msk [vmem:[%s1836_s3 + $0xa8] sm:$0xf] %vm960_vm1, %v1201_v56  ;;  %v1170_v63 = vpack.c.bf16 %v651_v57, %v651_v57  ;;  %v1202_v0 = vpack.c.bf16 %v683_v58, %v683_v58 }
  0xf1   :  { %969 = vst.msk [vmem:[%s1836_s3 + $0x20] sm:$0xf] %vm960_vm1, %v1167_v59  ;;  %1001 = vst.msk [vmem:[%s1836_s3 + $0xa0] sm:$0xf] %vm960_vm1, %v1199_v60  ;;  %v1168_v1 = vpack.c.bf16 %v649_v61, %v649_v61  ;;  %v1200_v2 = vpack.c.bf16 %v681_v62, %v681_v62  ;;  %v1272_v3 = vpop.f32.mrb[12].mxu0  ;;  %v1304_v4 = vpop.f32.mrb[12].mxu1 }
  0xf2   :  { %972 = vst.msk [vmem:[%s1836_s3 + $0x2c] sm:$0xf] %vm960_vm1, %v1170_v63  ;;  %1004 = vst.msk [vmem:[%s1836_s3 + $0xac] sm:$0xf] %vm960_vm1, %v1202_v0  ;;  %v442_v5 = vadd.f32 %v1272_v3, %v1511_v33  ;;  %v570_v6 = vadd.f32 %v1304_v4, %v1511_v33  ;;  %v433_v7 = vpop.f32.mrb[13].mxu0  ;;  %v561_v8 = vpop.f32.mrb[13].mxu1 }
  0xf3   :  { %970 = vst.msk [vmem:[%s1836_s3 + $0x24] sm:$0xf] %vm960_vm1, %v1168_v1  ;;  %1002 = vst.msk [vmem:[%s1836_s3 + $0xa4] sm:$0xf] %vm960_vm1, %v1200_v2  ;;  %v434_v9 = vadd.f32 %v1511_v33, %v433_v7  ;;  %v562_v10 = vadd.f32 %v1511_v33, %v561_v8  ;;  %v1273_v11 = vpop.f32.mrb[14].mxu0  ;;  %v1305_v12 = vpop.f32.mrb[14].mxu1 }
  0xf4   :  { %v654_v13 = vmax.f32 %v442_v5, 0.0  ;;  %v686_v14 = vmax.f32 %v570_v6, 0.0  ;;  %v445_v15 = vadd.f32 %v1273_v11, %v1511_v33  ;;  %v573_v16 = vadd.f32 %v1305_v12, %v1511_v33  ;;  %v436_v17 = vpop.f32.mrb[15].mxu0  ;;  %v564_v18 = vpop.f32.mrb[15].mxu1 }
  0xf5   :  { %v652_v19 = vmax.f32 %v434_v9, 0.0  ;;  %v684_v20 = vmax.f32 %v562_v10, 0.0  ;;  %v437_v21 = vadd.f32 %v1511_v33, %v436_v17  ;;  %v565_v22 = vadd.f32 %v1511_v33, %v564_v18 }
  0xf6   :  { %v1173_v23 = vpack.c.bf16 %v654_v13, %v654_v13  ;;  %v1205_v24 = vpack.c.bf16 %v686_v14, %v686_v14  ;;  %v655_v25 = vmax.f32 %v445_v15, 0.0  ;;  %v687_v26 = vmax.f32 %v573_v16, 0.0 }
  0xf7   :  { %v1171_v27 = vpack.c.bf16 %v652_v19, %v652_v19  ;;  %v1203_v28 = vpack.c.bf16 %v684_v20, %v684_v20  ;;  %v653_v29 = vmax.f32 %v437_v21, 0.0  ;;  %v685_v30 = vmax.f32 %v565_v22, 0.0 }
  0xf8   :  { %975 = vst.msk [vmem:[%s1836_s3 + $0x38] sm:$0xf] %vm960_vm1, %v1173_v23  ;;  %1007 = vst.msk [vmem:[%s1836_s3 + $0xb8] sm:$0xf] %vm960_vm1, %v1205_v24  ;;  %v1174_v31 = vpack.c.bf16 %v655_v25, %v655_v25  ;;  %v1206_v32 = vpack.c.bf16 %v687_v26, %v687_v26 }
  0xf9   :  { %973 = vst.msk [vmem:[%s1836_s3 + $0x30] sm:$0xf] %vm960_vm1, %v1171_v27  ;;  %1005 = vst.msk [vmem:[%s1836_s3 + $0xb0] sm:$0xf] %vm960_vm1, %v1203_v28  ;;  %v1172_v34 = vpack.c.bf16 %v653_v29, %v653_v29  ;;  %v1204_v35 = vpack.c.bf16 %v685_v30, %v685_v30  ;;  %v1276_v36 = vpop.f32.mrb[16].mxu0  ;;  %v1308_v37 = vpop.f32.mrb[16].mxu1 }
  0xfa   :  { %976 = vst.msk [vmem:[%s1836_s3 + $0x3c] sm:$0xf] %vm960_vm1, %v1174_v31  ;;  %1008 = vst.msk [vmem:[%s1836_s3 + $0xbc] sm:$0xf] %vm960_vm1, %v1206_v32  ;;  %v458_v38 = vadd.f32 %v1276_v36, %v1511_v33  ;;  %v586_v39 = vadd.f32 %v1308_v37, %v1511_v33  ;;  %v449_v40 = vpop.f32.mrb[17].mxu0  ;;  %v577_v41 = vpop.f32.mrb[17].mxu1 }
  0xfb   :  { %974 = vst.msk [vmem:[%s1836_s3 + $0x34] sm:$0xf] %vm960_vm1, %v1172_v34  ;;  %1006 = vst.msk [vmem:[%s1836_s3 + $0xb4] sm:$0xf] %vm960_vm1, %v1204_v35  ;;  %v450_v42 = vadd.f32 %v1511_v33, %v449_v40  ;;  %v578_v43 = vadd.f32 %v1511_v33, %v577_v41  ;;  %v1277_v44 = vpop.f32.mrb[18].mxu0  ;;  %v1309_v45 = vpop.f32.mrb[18].mxu1 }
  0xfc   :  { %v658_v46 = vmax.f32 %v458_v38, 0.0  ;;  %v690_v47 = vmax.f32 %v586_v39, 0.0  ;;  %v461_v48 = vadd.f32 %v1277_v44, %v1511_v33  ;;  %v589_v49 = vadd.f32 %v1309_v45, %v1511_v33  ;;  %v452_v50 = vpop.f32.mrb[19].mxu0  ;;  %v580_v51 = vpop.f32.mrb[19].mxu1 }
  0xfd   :  { %v656_v52 = vmax.f32 %v450_v42, 0.0  ;;  %v688_v53 = vmax.f32 %v578_v43, 0.0  ;;  %v453_v54 = vadd.f32 %v1511_v33, %v452_v50  ;;  %v581_v55 = vadd.f32 %v1511_v33, %v580_v51 }
  0xfe   :  { %v1177_v56 = vpack.c.bf16 %v658_v46, %v658_v46  ;;  %v1209_v57 = vpack.c.bf16 %v690_v47, %v690_v47  ;;  %v659_v58 = vmax.f32 %v461_v48, 0.0  ;;  %v691_v59 = vmax.f32 %v589_v49, 0.0 }
  0xff   :  { %v1175_v60 = vpack.c.bf16 %v656_v52, %v656_v52  ;;  %v1207_v61 = vpack.c.bf16 %v688_v53, %v688_v53  ;;  %v657_v62 = vmax.f32 %v453_v54, 0.0  ;;  %v689_v63 = vmax.f32 %v581_v55, 0.0 }
 0x100   :  { %979 = vst.msk [vmem:[%s1836_s3 + $0x48] sm:$0xf] %vm960_vm1, %v1177_v56  ;;  %1011 = vst.msk [vmem:[%s1836_s3 + $0xc8] sm:$0xf] %vm960_vm1, %v1209_v57  ;;  %v1178_v0 = vpack.c.bf16 %v659_v58, %v659_v58  ;;  %v1210_v1 = vpack.c.bf16 %v691_v59, %v691_v59 }
 0x101   :  { %977 = vst.msk [vmem:[%s1836_s3 + $0x40] sm:$0xf] %vm960_vm1, %v1175_v60  ;;  %1009 = vst.msk [vmem:[%s1836_s3 + $0xc0] sm:$0xf] %vm960_vm1, %v1207_v61  ;;  %v1176_v2 = vpack.c.bf16 %v657_v62, %v657_v62  ;;  %v1208_v3 = vpack.c.bf16 %v689_v63, %v689_v63  ;;  %v1280_v4 = vpop.f32.mrb[20].mxu0  ;;  %v1312_v5 = vpop.f32.mrb[20].mxu1 }
 0x102   :  { %980 = vst.msk [vmem:[%s1836_s3 + $0x4c] sm:$0xf] %vm960_vm1, %v1178_v0  ;;  %1012 = vst.msk [vmem:[%s1836_s3 + $0xcc] sm:$0xf] %vm960_vm1, %v1210_v1  ;;  %v474_v6 = vadd.f32 %v1280_v4, %v1511_v33  ;;  %v602_v7 = vadd.f32 %v1312_v5, %v1511_v33  ;;  %v465_v8 = vpop.f32.mrb[21].mxu0  ;;  %v593_v9 = vpop.f32.mrb[21].mxu1 }
 0x103   :  { %978 = vst.msk [vmem:[%s1836_s3 + $0x44] sm:$0xf] %vm960_vm1, %v1176_v2  ;;  %1010 = vst.msk [vmem:[%s1836_s3 + $0xc4] sm:$0xf] %vm960_vm1, %v1208_v3  ;;  %v466_v10 = vadd.f32 %v1511_v33, %v465_v8  ;;  %v594_v11 = vadd.f32 %v1511_v33, %v593_v9  ;;  %v1281_v12 = vpop.f32.mrb[22].mxu0  ;;  %v1313_v13 = vpop.f32.mrb[22].mxu1 }
 0x104   :  { %v662_v14 = vmax.f32 %v474_v6, 0.0  ;;  %v694_v15 = vmax.f32 %v602_v7, 0.0  ;;  %v477_v16 = vadd.f32 %v1281_v12, %v1511_v33  ;;  %v605_v17 = vadd.f32 %v1313_v13, %v1511_v33  ;;  %v468_v18 = vpop.f32.mrb[23].mxu0  ;;  %v596_v19 = vpop.f32.mrb[23].mxu1 }
 0x105   :  { %v660_v20 = vmax.f32 %v466_v10, 0.0  ;;  %v692_v21 = vmax.f32 %v594_v11, 0.0  ;;  %v469_v22 = vadd.f32 %v1511_v33, %v468_v18  ;;  %v597_v23 = vadd.f32 %v1511_v33, %v596_v19 }
 0x106   :  { %v1181_v24 = vpack.c.bf16 %v662_v14, %v662_v14  ;;  %v1213_v25 = vpack.c.bf16 %v694_v15, %v694_v15  ;;  %v663_v26 = vmax.f32 %v477_v16, 0.0  ;;  %v695_v27 = vmax.f32 %v605_v17, 0.0 }
 0x107   :  { %v1179_v28 = vpack.c.bf16 %v660_v20, %v660_v20  ;;  %v1211_v29 = vpack.c.bf16 %v692_v21, %v692_v21  ;;  %v661_v30 = vmax.f32 %v469_v22, 0.0  ;;  %v693_v31 = vmax.f32 %v597_v23, 0.0 }
 0x108   :  { %983 = vst.msk [vmem:[%s1836_s3 + $0x58] sm:$0xf] %vm960_vm1, %v1181_v24  ;;  %1015 = vst.msk [vmem:[%s1836_s3 + $0xd8] sm:$0xf] %vm960_vm1, %v1213_v25  ;;  %v1182_v32 = vpack.c.bf16 %v663_v26, %v663_v26  ;;  %v1214_v34 = vpack.c.bf16 %v695_v27, %v695_v27 }
 0x109   :  { %981 = vst.msk [vmem:[%s1836_s3 + $0x50] sm:$0xf] %vm960_vm1, %v1179_v28  ;;  %1013 = vst.msk [vmem:[%s1836_s3 + $0xd0] sm:$0xf] %vm960_vm1, %v1211_v29  ;;  %v1180_v35 = vpack.c.bf16 %v661_v30, %v661_v30  ;;  %v1212_v36 = vpack.c.bf16 %v693_v31, %v693_v31  ;;  %v1284_v37 = vpop.f32.mrb[24].mxu0  ;;  %v1316_v38 = vpop.f32.mrb[24].mxu1 }
 0x10a   :  { %984 = vst.msk [vmem:[%s1836_s3 + $0x5c] sm:$0xf] %vm960_vm1, %v1182_v32  ;;  %1016 = vst.msk [vmem:[%s1836_s3 + $0xdc] sm:$0xf] %vm960_vm1, %v1214_v34  ;;  %v490_v39 = vadd.f32 %v1284_v37, %v1511_v33  ;;  %v618_v40 = vadd.f32 %v1316_v38, %v1511_v33  ;;  %v481_v41 = vpop.f32.mrb[25].mxu0  ;;  %v609_v42 = vpop.f32.mrb[25].mxu1 }
 0x10b   :  { %982 = vst.msk [vmem:[%s1836_s3 + $0x54] sm:$0xf] %vm960_vm1, %v1180_v35  ;;  %1014 = vst.msk [vmem:[%s1836_s3 + $0xd4] sm:$0xf] %vm960_vm1, %v1212_v36  ;;  %v482_v43 = vadd.f32 %v1511_v33, %v481_v41  ;;  %v610_v44 = vadd.f32 %v1511_v33, %v609_v42  ;;  %v1285_v45 = vpop.f32.mrb[26].mxu0  ;;  %v1317_v46 = vpop.f32.mrb[26].mxu1 }
 0x10c   :  { %v666_v47 = vmax.f32 %v490_v39, 0.0  ;;  %v698_v48 = vmax.f32 %v618_v40, 0.0  ;;  %v493_v49 = vadd.f32 %v1285_v45, %v1511_v33  ;;  %v621_v50 = vadd.f32 %v1317_v46, %v1511_v33  ;;  %v484_v51 = vpop.f32.mrb[27].mxu0  ;;  %v612_v52 = vpop.f32.mrb[27].mxu1 }
 0x10d   :  { %v664_v53 = vmax.f32 %v482_v43, 0.0  ;;  %v696_v54 = vmax.f32 %v610_v44, 0.0  ;;  %v485_v55 = vadd.f32 %v1511_v33, %v484_v51  ;;  %v613_v56 = vadd.f32 %v1511_v33, %v612_v52 }
 0x10e   :  { %v1185_v57 = vpack.c.bf16 %v666_v47, %v666_v47  ;;  %v1217_v58 = vpack.c.bf16 %v698_v48, %v698_v48  ;;  %v667_v59 = vmax.f32 %v493_v49, 0.0  ;;  %v699_v60 = vmax.f32 %v621_v50, 0.0 }
 0x10f   :  { %v1183_v61 = vpack.c.bf16 %v664_v53, %v664_v53  ;;  %v1215_v62 = vpack.c.bf16 %v696_v54, %v696_v54  ;;  %v665_v63 = vmax.f32 %v485_v55, 0.0  ;;  %v697_v0 = vmax.f32 %v613_v56, 0.0 }
 0x110   :  { %987 = vst.msk [vmem:[%s1836_s3 + $0x68] sm:$0xf] %vm960_vm1, %v1185_v57  ;;  %1019 = vst.msk [vmem:[%s1836_s3 + $0xe8] sm:$0xf] %vm960_vm1, %v1217_v58  ;;  %v1186_v1 = vpack.c.bf16 %v667_v59, %v667_v59  ;;  %v1218_v2 = vpack.c.bf16 %v699_v60, %v699_v60 }
 0x111   :  { %985 = vst.msk [vmem:[%s1836_s3 + $0x60] sm:$0xf] %vm960_vm1, %v1183_v61  ;;  %1017 = vst.msk [vmem:[%s1836_s3 + $0xe0] sm:$0xf] %vm960_vm1, %v1215_v62  ;;  %v1184_v3 = vpack.c.bf16 %v665_v63, %v665_v63  ;;  %v1216_v4 = vpack.c.bf16 %v697_v0, %v697_v0  ;;  %v1288_v5 = vpop.f32.mrb[28].mxu0  ;;  %v1320_v6 = vpop.f32.mrb[28].mxu1 }
 0x112   :  { %988 = vst.msk [vmem:[%s1836_s3 + $0x6c] sm:$0xf] %vm960_vm1, %v1186_v1  ;;  %1020 = vst.msk [vmem:[%s1836_s3 + $0xec] sm:$0xf] %vm960_vm1, %v1218_v2  ;;  %v506_v7 = vadd.f32 %v1288_v5, %v1511_v33  ;;  %v634_v8 = vadd.f32 %v1320_v6, %v1511_v33  ;;  %v497_v9 = vpop.f32.mrb[29].mxu0  ;;  %v625_v10 = vpop.f32.mrb[29].mxu1 }
 0x113   :  { %986 = vst.msk [vmem:[%s1836_s3 + $0x64] sm:$0xf] %vm960_vm1, %v1184_v3  ;;  %1018 = vst.msk [vmem:[%s1836_s3 + $0xe4] sm:$0xf] %vm960_vm1, %v1216_v4  ;;  %v498_v11 = vadd.f32 %v1511_v33, %v497_v9  ;;  %v626_v12 = vadd.f32 %v1511_v33, %v625_v10  ;;  %v1289_v13 = vpop.f32.mrb[30].mxu0  ;;  %v1321_v14 = vpop.f32.mrb[30].mxu1 }
 0x114   :  { %v670_v15 = vmax.f32 %v506_v7, 0.0  ;;  %v702_v16 = vmax.f32 %v634_v8, 0.0  ;;  %v509_v17 = vadd.f32 %v1289_v13, %v1511_v33  ;;  %v637_v18 = vadd.f32 %v1321_v14, %v1511_v33  ;;  %v500_v19 = vpop.f32.mrb[31].mxu0  ;;  %v628_v20 = vpop.f32.mrb[31].mxu1 }
 0x115   :  { %v668_v21 = vmax.f32 %v498_v11, 0.0  ;;  %v700_v22 = vmax.f32 %v626_v12, 0.0  ;;  %v501_v23 = vadd.f32 %v1511_v33, %v500_v19  ;;  %v629_v24 = vadd.f32 %v1511_v33, %v628_v20 }
 0x116   :  { %v1189_v25 = vpack.c.bf16 %v670_v15, %v670_v15  ;;  %v1221_v26 = vpack.c.bf16 %v702_v16, %v702_v16  ;;  %v671_v27 = vmax.f32 %v509_v17, 0.0  ;;  %v703_v28 = vmax.f32 %v637_v18, 0.0 }
 0x117   :  { %v1187_v29 = vpack.c.bf16 %v668_v21, %v668_v21  ;;  %v1219_v30 = vpack.c.bf16 %v700_v22, %v700_v22  ;;  %v669_v31 = vmax.f32 %v501_v23, 0.0  ;;  %v701_v32 = vmax.f32 %v629_v24, 0.0 }
 0x118   :  { %991 = vst.msk [vmem:[%s1836_s3 + $0x78] sm:$0xf] %vm960_vm1, %v1189_v25  ;;  %1023 = vst.msk [vmem:[%s1836_s3 + $0xf8] sm:$0xf] %vm960_vm1, %v1221_v26  ;;  %v1190_v34 = vpack.c.bf16 %v671_v27, %v671_v27  ;;  %v1222_v33 = vpack.c.bf16 %v703_v28, %v703_v28 }
 0x119   :  { %989 = vst.msk [vmem:[%s1836_s3 + $0x70] sm:$0xf] %vm960_vm1, %v1187_v29  ;;  %1021 = vst.msk [vmem:[%s1836_s3 + $0xf0] sm:$0xf] %vm960_vm1, %v1219_v30  ;;  %v1188_v35 = vpack.c.bf16 %v669_v31, %v669_v31  ;;  %v1220_v36 = vpack.c.bf16 %v701_v32, %v701_v32 }
 0x11a   :  { %992 = vst.msk [vmem:[%s1836_s3 + $0x7c] sm:$0xf] %vm960_vm1, %v1190_v34  ;;  %1024 = vst.msk [vmem:[%s1836_s3 + $0xfc] sm:$0xf] %vm960_vm1, %v1222_v33 }
 0x11b   :  { %990 = vst.msk [vmem:[%s1836_s3 + $0x74] sm:$0xf] %vm960_vm1, %v1188_v35  ;;  %1022 = vst.msk [vmem:[%s1836_s3 + $0xf4] sm:$0xf] %vm960_vm1, %v1220_v36 }

</bundles_post_ra>
